<compile_context>
chip_gen: v5e
topology: v5e:2x2
jax: 0.10.0
libtpu: 0.0.40
codegen_flags: <defaults>
</compile_context>

<pallas_src>
from functools import partial

import jax
import jax.numpy as jnp
from jax import lax
from jax.experimental import pallas as pl
from jax.experimental.pallas import tpu as pltpu


def _round_up(x, m):
    return ((x + m - 1) // m) * m


def _equal_linear_kernel(x_ref, w_ref, b_ref, o_ref, *, lr_mul):
    """One (i, j, k) grid step of y = lr_mul * (x @ W.T + b).

    x tile: (tm, tk); w tile: (tn, tk); bias tile: (1, tn); out tile: (tm, tn).
    The f32 output block is resident across K and doubles as the accumulator.
    """
    k = pl.program_id(2)

    @pl.when(k == 0)
    def _():
        o_ref[...] = jnp.zeros_like(o_ref)

    # Contract both operands on their LAST dim so the MXU consumes the
    # (out_dim, in_dim) weight tile natively -- no W.T materialization.
    o_ref[...] += lax.dot_general(
        x_ref[...],
        w_ref[...],
        dimension_numbers=(((1,), (1,)), ((), ())),
        preferred_element_type=jnp.float32,
    )

    @pl.when(k == pl.num_programs(2) - 1)
    def _():
        # lr_mul folded into the small epilogue: x@(lr*W).T + lr*b == lr*(x@W.T + b)
        o_ref[...] = (o_ref[...] + b_ref[...]) * lr_mul


def _pick_tiles(B, N, K, tm_max, tn_max, tk_max):
    """(8,128)-aligned tiles, VMEM-budgeted per TPU generation, N split into
    >=2 blocks when the batch axis cannot feed both v7x TensorCores."""
    tm = min(tm_max, _round_up(B, 8))
    np0 = _round_up(N, 128)
    kp0 = _round_up(K, 128)
    tn = min(tn_max, np0)
    tk = min(tk_max, kp0)

    # Megacore (v7x): if M has a single block, try to give N >= 2 blocks.
    # Only accept a tn that divides the 128-padded N so no extra padding is added.
    m_blocks = _round_up(B, tm) // tm
    n128 = np0 // 128
    if m_blocks < 2 and n128 >= 2:
        for nblk in range(2, n128 + 1):
            if n128 % nblk == 0 and (np0 // nblk) <= tn:
                tn = np0 // nblk
                break

    # Generation-aware VMEM budget (v7x: 64 MiB physical per TC).
    try:
        info = pltpu.get_tpu_info()
        vmem_cap = int(getattr(info, "vmem_capacity_bytes", 64 << 20))
    except Exception:  # interpret mode / older runtimes
        vmem_cap = 64 << 20
    budget = min(vmem_cap // 2, 24 << 20)

    def vmem_bytes(tm_, tn_, tk_):
        # double-buffered x / w / bias tiles + (conservatively double-buffered)
        # resident f32 output tile
        return 2 * (tm_ * tk_ + tn_ * tk_ + tm_ * tn_ + tn_) * 4

    while vmem_bytes(tm, tn, tk) > budget and tk > 128:
        tk = _round_up(max(128, tk // 2), 128)
    while vmem_bytes(tm, tn, tk) > budget and tm > 8:
        tm = _round_up(max(8, tm // 2), 8)

    vmem_limit = int(min(vmem_cap, max(2 * vmem_bytes(tm, tn, tk), 32 << 20)))
    return tm, tn, tk, vmem_limit


def equal_linear(x, weight, bias, lr_mul=0.1, *, tm=256, tn=512, tk=1024):
    """Pallas TPU implementation of EqualLinear.forward.

    x:      (batch, in_dim)   float32
    weight: (out_dim, in_dim) float32
    bias:   (out_dim,)        float32
    returns (batch, out_dim)  float32
    """
    B, K = x.shape
    N, Kw = weight.shape
    assert K == Kw, "in_dim mismatch between x and weight"
    assert bias.shape == (N,)

    tm, tn, tk, vmem_limit = _pick_tiles(B, N, K, tm, tn, tk)
    Mp, Np, Kp = _round_up(B, tm), _round_up(N, tn), _round_up(K, tk)

    # Pad only when strictly needed (aligned dims skip this entirely).
    # K-padding must stay zero-filled: it feeds the reduction.
    x_p = x if (Mp, Kp) == (B, K) else jnp.pad(x, ((0, Mp - B), (0, Kp - K)))
    w_p = weight if (Np, Kp) == (N, K) else jnp.pad(weight, ((0, Np - N), (0, Kp - K)))
    b2 = bias.reshape(1, N)
    b_p = b2 if Np == N else jnp.pad(b2, ((0, 0), (0, Np - N)))

    grid = (Mp // tm, Np // tn, Kp // tk)  # reduction axis (K) last

    out = pl.pallas_call(
        partial(_equal_linear_kernel, lr_mul=lr_mul),
        out_shape=jax.ShapeDtypeStruct((Mp, Np), jnp.float32),
        grid_spec=pltpu.PrefetchScalarGridSpec(
            num_scalar_prefetch=0,
            grid=grid,
            in_specs=[
                pl.BlockSpec((tm, tk), lambda i, j, k: (i, k)),   # x
                pl.BlockSpec((tn, tk), lambda i, j, k: (j, k)),   # W (row-major, no T)
                pl.BlockSpec((1, tn), lambda i, j, k: (0, j)),    # bias, per-N tile
            ],
            out_specs=pl.BlockSpec((tm, tn), lambda i, j, k: (i, j)),
        ),
        compiler_params=pltpu.CompilerParams(
            # batch / out_dim parallel (sharded across v7x's 2 TCs), K reduction arbitrary.
            dimension_semantics=("parallel", "parallel", "arbitrary"),
            vmem_limit_bytes=vmem_limit,
        ),
        cost_estimate=pl.CostEstimate(
            flops=2 * Mp * Np * Kp,
            transcendentals=0,
            bytes_accessed=4 * (Mp * Kp + Np * Kp + Mp * Np + Np),
        ),
    )(x_p, w_p, b_p)

    if (Mp, Np) != (B, N):
        out = out[:B, :N]
    return out


if __name__ == "__main__":
    key = jax.random.PRNGKey(0)
    kx, kw, kb = jax.random.split(key, 3)

    # Shapes implied by the module: x (batch, in_dim), weight (out_dim, in_dim).
    batch, in_dim, out_dim = 8, 32, 16
    lr_mul = 0.1

    x = jax.random.normal(kx, (batch, in_dim), dtype=jnp.float32)
    weight = jax.random.normal(kw, (out_dim, in_dim), dtype=jnp.float32)
    # Module inits bias to zeros; use random values to exercise the bias path.
    bias = jax.random.normal(kb, (out_dim,), dtype=jnp.float32)

    y = equal_linear(x, weight, bias, lr_mul=lr_mul)
    y = jax.block_until_ready(y)

    # Reference: F.linear(x, W*lr, b*lr) semantics in plain JAX.
    y_ref = x @ (weight * lr_mul).T + bias * lr_mul
    assert y.shape == (batch, out_dim)
    assert jnp.allclose(y, y_ref, atol=1e-5, rtol=1e-5)

    print("KERNEL_OK")
</pallas_src>

<mosaic_0001>
module attributes {stable_mosaic.version = 11 : i64} {
  func.func @_equal_linear_kernel(%arg0: i32, %arg1: i32, %arg2: i32, %arg3: memref<8x128xf32, #tpu.memory_space<vmem>>, %arg4: memref<128x128xf32, #tpu.memory_space<vmem>>, %arg5: memref<1x128xf32, #tpu.memory_space<vmem>>, %arg6: memref<8x128xf32, #tpu.memory_space<vmem>>) attributes {dimension_semantics = [#tpu.dimension_semantics<parallel>, #tpu.dimension_semantics<parallel>, #tpu.dimension_semantics<arbitrary>], iteration_bounds = array<i64: 1, 1, 1>, scalar_prefetch = 0 : i64, scratch_operands = 0 : i64, tpu.core_type = #tpu.core_type<tc>, window_params = [{transform_indices = @transform_0, window_bounds = array<i64: 8, 128>}, {transform_indices = @transform_1, window_bounds = array<i64: 128, 128>}, {transform_indices = @transform_2, window_bounds = array<i64: 1, 128>}, {transform_indices = @transform_3, window_bounds = array<i64: 8, 128>}]} {
    %c0_i32 = arith.constant 0 : i32
    %0 = arith.cmpi eq, %arg2, %c0_i32 : i32
    %1 = arith.extui %0 : i1 to i32
    %c0_i32_0 = arith.constant 0 : i32
    %2 = arith.cmpi ne, %1, %c0_i32_0 : i32
    scf.if %2 {
      %cst_10 = arith.constant 0.000000e+00 : f32
      %12 = vector.broadcast %cst_10 : f32 to vector<8x128xf32>
      %c0_11 = arith.constant 0 : index
      %c0_12 = arith.constant 0 : index
      %13 = vector.load %arg6[%c0_11, %c0_12] : memref<8x128xf32, #tpu.memory_space<vmem>>, vector<8x128xf32>
      tpu.vector_store %arg6[%c0_11, %c0_12], %12 {strides = array<i32>} : memref<8x128xf32, #tpu.memory_space<vmem>>, vector<8x128xf32>,
    } else {
    }
    %c0 = arith.constant 0 : index
    %c0_1 = arith.constant 0 : index
    %3 = vector.load %arg6[%c0, %c0_1] : memref<8x128xf32, #tpu.memory_space<vmem>>, vector<8x128xf32>
    %c0_2 = arith.constant 0 : index
    %c0_3 = arith.constant 0 : index
    %4 = vector.load %arg3[%c0_2, %c0_3] : memref<8x128xf32, #tpu.memory_space<vmem>>, vector<8x128xf32>
    %c0_4 = arith.constant 0 : index
    %c0_5 = arith.constant 0 : index
    %5 = vector.load %arg4[%c0_4, %c0_5] : memref<128x128xf32, #tpu.memory_space<vmem>>, vector<128x128xf32>
    %cst = arith.constant dense<0.000000e+00> : vector<8x128xf32>
    %6 = tpu.matmul %4, %5, %cst {dimension_numbers = #tpu.dot_dimension_numbers<[1], [1], [0], [0], [0, 0, 1, 0], [], []>} : vector<8x128xf32>, vector<128x128xf32>, vector<8x128xf32> -> vector<8x128xf32>
    %7 = arith.addf %3, %6 : vector<8x128xf32>
    %c0_6 = arith.constant 0 : index
    %c0_7 = arith.constant 0 : index
    %8 = vector.load %arg6[%c0_6, %c0_7] : memref<8x128xf32, #tpu.memory_space<vmem>>, vector<8x128xf32>
    tpu.vector_store %arg6[%c0_6, %c0_7], %7 {strides = array<i32>} : memref<8x128xf32, #tpu.memory_space<vmem>>, vector<8x128xf32>,
    %c0_i32_8 = arith.constant 0 : i32
    %9 = arith.cmpi eq, %arg2, %c0_i32_8 : i32
    %10 = arith.extui %9 : i1 to i32
    %c0_i32_9 = arith.constant 0 : i32
    %11 = arith.cmpi ne, %10, %c0_i32_9 : i32
    scf.if %11 {
      %c0_10 = arith.constant 0 : index
      %c0_11 = arith.constant 0 : index
      %12 = vector.load %arg6[%c0_10, %c0_11] : memref<8x128xf32, #tpu.memory_space<vmem>>, vector<8x128xf32>
      %c0_12 = arith.constant 0 : index
      %c0_13 = arith.constant 0 : index
      %13 = vector.load %arg5[%c0_12, %c0_13] : memref<1x128xf32, #tpu.memory_space<vmem>>, vector<1x128xf32>
      %14 = vector.broadcast %13 : vector<1x128xf32> to vector<8x128xf32>
      %15 = arith.addf %12, %14 : vector<8x128xf32>
      %cst_14 = arith.constant 1.000000e-01 : f32
      %16 = vector.broadcast %cst_14 : f32 to vector<8x128xf32>
      %17 = arith.mulf %15, %16 : vector<8x128xf32>
      %c0_15 = arith.constant 0 : index
      %c0_16 = arith.constant 0 : index
      %18 = vector.load %arg6[%c0_15, %c0_16] : memref<8x128xf32, #tpu.memory_space<vmem>>, vector<8x128xf32>
      tpu.vector_store %arg6[%c0_15, %c0_16], %17 {strides = array<i32>} : memref<8x128xf32, #tpu.memory_space<vmem>>, vector<8x128xf32>,
    } else {
    }
    return
  }
  func.func @transform_0(%arg0: i32, %arg1: i32, %arg2: i32) -> (i32, i32) {
    %c0_i32 = arith.constant 0 : i32
    return %arg0, %arg2 : i32, i32
  }
  func.func @transform_1(%arg0: i32, %arg1: i32, %arg2: i32) -> (i32, i32) {
    %c0_i32 = arith.constant 0 : i32
    return %arg1, %arg2 : i32, i32
  }
  func.func @transform_2(%arg0: i32, %arg1: i32, %arg2: i32) -> (i32, i32) {
    %c0_i32 = arith.constant 0 : i32
    %c0_i32_0 = arith.constant 0 : i32
    return %c0_i32, %arg1 : i32, i32
  }
  func.func @transform_3(%arg0: i32, %arg1: i32, %arg2: i32) -> (i32, i32) {
    %c0_i32 = arith.constant 0 : i32
    return %arg0, %arg1 : i32, i32
  }
}

</mosaic_0001>

<bundles_post_ra>
// kernel: tpu_custom_call.1
= control target key start
LH: loop header
LB: loop body
LE: loop exit
PB: predicated region body
PF: predicated region fallthrough
CT: control target
= control target key end

     0   :  { %8 = vsyncpa [#allocation3], 0  ;;  %s241_s0 = inlined_call_operand.hbm [shape: f32[8,128], index: 0, kind: input, shape index: {}]   ;;  %s242_s1 = inlined_call_operand.hbm [shape: f32[128,128], index: 1, kind: input, shape index: {}]   ;;  %s243_s2 = inlined_call_operand.vmem [shape: f32[1,128], index: 2, kind: input, shape index: {}]   ;;  %s244_s3 = inlined_call_operand.hbm [shape: f32[8,128], index: 3, kind: output, shape index: {}]  }
   0x1   :  { %9 = vsyncpa [#allocation6], 0 }
   0x2   :  { %10 = vsyncpa [#allocation4], 0  ;;  %s16_s14 = sshll.u32 %s241_s0, 4  ;;  %s204_s15 = smov [#allocation2]   ;;  %s17_s14 = int_to_ptr.hbm [resolvable:$true] %s16_s14 }
   0x3   :  { %s18_s16 = sshll.u32 %s204_s15, 4  ;;  %s26_s19 = sshll.u32 %s242_s1, 4  ;;  %s19_s16 = int_to_ptr.vmem [resolvable:$true] %s18_s16  ;;  %s27_s19 = int_to_ptr.hbm [resolvable:$true] %s26_s19 }
   0x4   :  { %21 = dma.hbm_to_vmem [thread:$0]  %s17_s14, 128, %s19_s16, [#allocation3]  }
   0x5   :  { %s205_s20 = smov [#allocation5]   ;;  %s206_s22 = smov 128  }
   0x6   :  { %s28_s21 = sshll.u32 %s205_s20, 4  ;;  %s207_s23 = smov 8   ;;  %s29_s21 = int_to_ptr.vmem [resolvable:$true] %s28_s21 }
   0x7   :  { %34 = dma.hbm_to_vmem [thread:$0]  %s27_s19, 2048, %s29_s21, [#allocation6], %s206_s22, %s206_s22, %s207_s23  }
   0x8   :  { %198 = dma.done.wait [#allocation3], 128  }
   0x9   :  { %199 = vsyncadd [#allocation3], 4294967168 }
   0xa   :  { %200 = dma.done.wait [#allocation6], 2048  }
   0xb   :  { %201 = vsyncadd [#allocation6], 4294965248  ;;  %v67_v0 = vld [vmem:[#allocation5 + $0x78] sm:$0xff]  ;;  %v66_v1 = vld [vmem:[#allocation5 + $0x70] sm:$0xff]  ;;  %s208_s24 = smov [#allocation7]   ;;  %s108_s28 = sshll.u32 %s244_s3, 4  ;;  %s109_s28 = int_to_ptr.hbm [resolvable:$true] %s108_s28 }
   0xc   :  { %68 = vmatpush.xpose.msra.mxu0 %v67_v0  ;;  %v65_v2 = vld [vmem:[#allocation5 + $0x68] sm:$0xff]  ;;  %v64_v3 = vld [vmem:[#allocation5 + $0x60] sm:$0xff]  ;;  %v63_v4 = vld [vmem:[#allocation5 + $0x58] sm:$0xff]  ;;  %s106_s25 = sshll.u32 %s208_s24, 4  ;;  %s107_s25 = int_to_ptr.vmem [resolvable:$true] %s106_s25 }
   0xd   :  { %v62_v5 = vld [vmem:[#allocation5 + $0x50] sm:$0xff]  ;;  %v61_v6 = vld [vmem:[#allocation5 + $0x48] sm:$0xff]  ;;  %v60_v7 = vld [vmem:[#allocation5 + $0x40] sm:$0xff] }
   0xe   :  { %v59_v8 = vld [vmem:[#allocation5 + $0x38] sm:$0xff]  ;;  %v58_v9 = vld [vmem:[#allocation5 + $0x30] sm:$0xff]  ;;  %v57_v10 = vld [vmem:[#allocation5 + $0x28] sm:$0xff] }
   0xf   :  { %v56_v11 = vld [vmem:[#allocation5 + $0x20] sm:$0xff]  ;;  %v55_v12 = vld [vmem:[#allocation5 + $0x18] sm:$0xff]  ;;  %v54_v13 = vld [vmem:[#allocation5 + $0x10] sm:$0xff] }
  0x10   :  { %69 = vmatpush.xpose.msra.mxu0 %v66_v1  ;;  %v53_v14 = vld [vmem:[#allocation5 + $0x8] sm:$0xff]  ;;  %v52_v15 = vld [vmem:[#allocation5] sm:$0xff]  ;;  %v51_v16 = vld [vmem:[#allocation2] sm:$0xff] }
  0x11   :  { %v125_v17 = vld [vmem:[%s243_s2] ss:$0 sm:$0xff] }
  0x14   :  { %70 = vmatpush.xpose.msra.mxu0 %v65_v2 }
  0x18   :  { %71 = vmatpush.xpose.msra.mxu0 %v64_v3 }
  0x1c   :  { %72 = vmatpush.xpose.msra.mxu0 %v63_v4 }
  0x20   :  { %73 = vmatpush.xpose.msra.mxu0 %v62_v5 }
  0x24   :  { %74 = vmatpush.xpose.msra.mxu0 %v61_v6 }
  0x28   :  { %75 = vmatpush.xpose.msra.mxu0 %v60_v7 }
  0x2c   :  { %76 = vmatpush.xpose.msra.mxu0 %v59_v8 }
  0x30   :  { %77 = vmatpush.xpose.msra.mxu0 %v58_v9 }
  0x34   :  { %78 = vmatpush.xpose.msra.mxu0 %v57_v10 }
  0x38   :  { %79 = vmatpush.xpose.msra.mxu0 %v56_v11 }
  0x3c   :  { %80 = vmatpush.xpose.msra.mxu0 %v55_v12 }
  0x40   :  { %81 = vmatpush.xpose.msra.mxu0 %v54_v13 }
  0x44   :  { %82 = vmatpush.xpose.msra.mxu0 %v53_v14 }
  0x48   :  { %83 = vmatpush.xpose.msra.mxu0 %v52_v15 }
  0x4b   :  { %84 = vmatmul.f32.vlgmr.msra.gmra.mxu0 %v51_v16 }
  0xc8   :  { %v85_v18 = vpop.f32.mrf.mxu0 }
  0xc9   :  { %v98_v19 = vadd.f32 %v125_v17, %v85_v18 }
  0xcb   :  { %v99_v20 = vmul.f32 0.1, %v98_v19 }
  0xcd   :  { %100 = vst [vmem:[#allocation7] sm:$0xff] %v99_v20 }
  0xce   :  { %111 = dma.vmem_to_hbm [thread:$0]  %s107_s25, 128, %s109_s28, [#allocation4]  }
  0xcf   :  { %202 = dma.done.wait [#allocation4], 128  }
  0xd0   :  { %203 = vsyncadd [#allocation4], 4294967168 }
  0xd1   :  { %116 = vsyncpa [#allocation3], 1 }
  0xd2   :  { %117 = vsyncpa [#allocation6], 1 }
  0xd3   :  { %118 = vsyncpa [#allocation4], 1 }

</bundles_post_ra>
